<compile_context>
chip_gen: v5e
topology: v5e:2x2
jax: 0.10.0
libtpu: 0.0.40
codegen_flags: <defaults>
</compile_context>

<pallas_src>
import math
from functools import partial

import jax
import jax.numpy as jnp
from jax.experimental import pallas as pl
from jax.experimental.pallas import tpu as pltpu


def make_positional_encoding(d_model: int, max_len: int = 5000) -> jnp.ndarray:
    """Deterministic buffer, identical math to the PyTorch __init__ (even d_model)."""
    position = jnp.arange(max_len, dtype=jnp.float32)[:, None]              # (max_len, 1)
    div_term = jnp.exp(
        jnp.arange(0, d_model, 2, dtype=jnp.float32) * (-math.log(10000.0) / d_model)
    )                                                                        # (ceil(d/2),)
    angles = position * div_term                                             # (max_len, ceil(d/2))
    pe = jnp.zeros((max_len, d_model), dtype=jnp.float32)
    pe = pe.at[:, 0::2].set(jnp.sin(angles))
    pe = pe.at[:, 1::2].set(jnp.cos(angles[:, : d_model // 2]))
    return pe                                                                # (max_len, d_model)


def _pe_add_kernel(x_ref, pe_ref, o_ref, *, batch: int):
    # x_ref / o_ref : (ts, B*D) lane-dense tile of the flattened input/output
    # pe_ref        : (ts, D)   matching positional-encoding rows
    pe = pe_ref[...]
    if batch > 1:
        # Lane-replicate pe across the batch axis inside VMEM (small tile),
        # avoiding a pre-expanded (S, B*D) pe stream from HBM.
        pe = jnp.concatenate([pe] * batch, axis=-1)                          # (ts, B*D)
    o_ref[...] = x_ref[...] + pe


def _choose_seq_tile(seq_len: int, row_bytes: int,
                     target_tile_bytes: int = 2 << 20) -> int:
    """Seq rows per tile: multiple of 8 (vreg sublanes), ~2 MiB per x tile so the
    double-buffered in+out working set stays ~10 MiB (fits every generation's
    scoped-VMEM default, including v7x's smaller physical VMEM)."""
    if seq_len <= 8:
        return seq_len
    rows = max(8, (target_tile_bytes // max(row_bytes, 1)) // 8 * 8)
    return seq_len if rows >= seq_len else rows


def positional_encoding_forward(x: jnp.ndarray, pe: jnp.ndarray) -> jnp.ndarray:
    """x: (S, B, D); pe: (max_len, D). Returns x + pe[:S] broadcast over batch."""
    S, B, D = x.shape
    pe_sliced = pe[:S].astype(x.dtype)        # (S, D) small side input, kernel dtype = x dtype
    x_flat = x.reshape(S, B * D)              # free contiguous collapse (row-major)

    ts = _choose_seq_tile(S, B * D * x.dtype.itemsize)
    grid = (pl.cdiv(S, ts),)

    out_flat = pl.pallas_call(
        partial(_pe_add_kernel, batch=B),
        out_shape=jax.ShapeDtypeStruct((S, B * D), x.dtype),
        grid_spec=pltpu.PrefetchScalarGridSpec(
            num_scalar_prefetch=0,
            grid=grid,
            in_specs=[
                pl.BlockSpec((ts, B * D), lambda i: (i, 0)),   # x tile (lane-dense)
                pl.BlockSpec((ts, D), lambda i: (i, 0)),       # pe rows for this tile
            ],
            out_specs=pl.BlockSpec((ts, B * D), lambda i: (i, 0)),
        ),
        input_output_aliases={0: 0},          # add in place on x's HBM buffer
        compiler_params=pltpu.CompilerParams(
            dimension_semantics=("parallel",),   # seq tiles shard across megacore TCs
        ),
    )(x_flat, pe_sliced)

    # TODO(synk): nn.Dropout(p=0.1) -- eval-mode identity here; training-mode
    # dropout would use pltpu.prng_seed + pltpu.prng_random_bits in-kernel.
    return out_flat.reshape(S, B, D)


if __name__ == "__main__":
    # --- small shape matching the module's convention (seq, batch, d_model) ---
    d_model = 32
    max_len = 64
    seq_len = 8
    batch = 2

    key = jax.random.PRNGKey(0)
    x = jax.random.normal(key, (seq_len, batch, d_model), dtype=jnp.float32)
    pe = make_positional_encoding(d_model, max_len)

    # Reference computed BEFORE the kernel call (kernel may alias its input buffer).
    ref = x + pe[:seq_len][:, None, :]
    out = jax.block_until_ready(positional_encoding_forward(x, pe))
    assert out.shape == (seq_len, batch, d_model)
    assert jnp.allclose(out, ref, atol=1e-6), "mismatch vs reference (small)"

    # --- larger shape to exercise the multi-tile, pipelined, parallel grid path ---
    S2, B2, D2 = 1024, 4, 256
    x_big = jax.random.normal(jax.random.PRNGKey(1), (S2, B2, D2), dtype=jnp.float32)
    pe_big = make_positional_encoding(D2, S2)
    ref_big = x_big + pe_big[:S2][:, None, :]
    out_big = jax.block_until_ready(positional_encoding_forward(x_big, pe_big))
    assert jnp.allclose(out_big, ref_big, atol=1e-6), "mismatch vs reference (tiled)"

    print("KERNEL_OK")
</pallas_src>

<mosaic_0001>
module attributes {stable_mosaic.version = 11 : i64} {
  func.func @_pe_add_kernel(%arg0: i32, %arg1: memref<8x64xf32, #tpu.memory_space<vmem>>, %arg2: memref<8x32xf32, #tpu.memory_space<vmem>>, %arg3: memref<8x64xf32, #tpu.memory_space<vmem>>) attributes {dimension_semantics = [#tpu.dimension_semantics<parallel>], iteration_bounds = array<i64: 1>, scalar_prefetch = 0 : i64, scratch_operands = 0 : i64, tpu.core_type = #tpu.core_type<tc>, window_params = [{transform_indices = @transform_0, window_bounds = array<i64: 8, 64>}, {transform_indices = @transform_1, window_bounds = array<i64: 8, 32>}, {transform_indices = @transform_2, window_bounds = array<i64: 8, 64>}]} {
    %c0 = arith.constant 0 : index
    %c0_0 = arith.constant 0 : index
    %0 = vector.load %arg2[%c0, %c0_0] : memref<8x32xf32, #tpu.memory_space<vmem>>, vector<8x32xf32>
    %1 = tpu.concatenate %0, %0 in 1 : vector<8x32xf32>, vector<8x32xf32> -> vector<8x64xf32>
    %c0_1 = arith.constant 0 : index
    %c0_2 = arith.constant 0 : index
    %2 = vector.load %arg1[%c0_1, %c0_2] : memref<8x64xf32, #tpu.memory_space<vmem>>, vector<8x64xf32>
    %3 = arith.addf %2, %1 : vector<8x64xf32>
    %c0_3 = arith.constant 0 : index
    %c0_4 = arith.constant 0 : index
    %4 = vector.load %arg3[%c0_3, %c0_4] : memref<8x64xf32, #tpu.memory_space<vmem>>, vector<8x64xf32>
    tpu.vector_store %arg3[%c0_3, %c0_4], %3 {strides = array<i32>} : memref<8x64xf32, #tpu.memory_space<vmem>>, vector<8x64xf32>,
    return
  }
  func.func @transform_0(%arg0: i32) -> (i32, i32) {
    %c0_i32 = arith.constant 0 : i32
    %c0_i32_0 = arith.constant 0 : i32
    return %arg0, %c0_i32 : i32, i32
  }
  func.func @transform_1(%arg0: i32) -> (i32, i32) {
    %c0_i32 = arith.constant 0 : i32
    %c0_i32_0 = arith.constant 0 : i32
    return %arg0, %c0_i32 : i32, i32
  }
  func.func @transform_2(%arg0: i32) -> (i32, i32) {
    %c0_i32 = arith.constant 0 : i32
    %c0_i32_0 = arith.constant 0 : i32
    return %arg0, %c0_i32 : i32, i32
  }
}

</mosaic_0001>

<bundles_post_ra>
// kernel: tpu_custom_call.1
= control target key start
LH: loop header
LB: loop body
LE: loop exit
PB: predicated region body
PF: predicated region fallthrough
CT: control target
= control target key end

     0   :  { %7 = vsyncpa [#allocation3], 0  ;;  %s136_s0 = inlined_call_operand.hbm [shape: f32[8,64], index: 0, kind: input, shape index: {}, may-alias: {0,2}]   ;;  %s137_s1 = inlined_call_operand.vmem [shape: f32[8,32], index: 1, kind: input, shape index: {}]   ;;  %s138_s2 = inlined_call_operand.hbm [shape: f32[8,64], index: 2, kind: output, shape index: {}, may-alias: {0,2}]  }
   0x1   :  { %8 = vsyncpa [#allocation4], 0  ;;  %s14_s11 = sshll.u32 %s136_s0, 4  ;;  %s109_s12 = smov [#allocation2]   ;;  %s15_s11 = int_to_ptr.hbm [resolvable:$true] %s14_s11 }
   0x2   :  { %s16_s13 = sshll.u32 %s109_s12, 4  ;;  %s17_s13 = int_to_ptr.vmem [resolvable:$true] %s16_s13 }
   0x3   :  { %19 = dma.hbm_to_vmem [thread:$0]  %s15_s11, 128, %s17_s13, [#allocation3]  }
   0x4   :  { %105 = dma.done.wait [#allocation3], 128  }
   0x5   :  { %106 = vsyncadd [#allocation3], 4294967168  ;;  %v26_v0 = vld [vmem:[%s137_s1] sm:$0xff]  ;;  %s110_s16 = smov 32   ;;  %vm31_vm0 = vcmask 261120   ;;  %s111_s17 = smov [#allocation5]  }
   0x6   :  { %28 = vrot.lane.b32.xlu0 %v26_v0, %s110_s16  ;;  %v33_v1 = vld [vmem:[#allocation2] sm:$0xff]  ;;  %s42_s18 = sshll.u32 %s111_s17, 4  ;;  %s44_s0 = sshll.u32 %s138_s2, 4  ;;  %vm35_vm1 = vcmask 523264   ;;  %s43_s18 = int_to_ptr.vmem [resolvable:$true] %s42_s18  ;;  %s45_s0 = int_to_ptr.hbm [resolvable:$true] %s44_s0 }
  0x78   :  { %v29_v2 = vpop.permute.xlu0 %28 }
  0x79   :  { %v32_v3 = vsel %vm31_vm0, %v26_v0, %v29_v2 }
  0x7a   :  { %v34_v4 = vadd.f32 %v33_v1, %v32_v3 }
  0x7c   :  { %36 = vst.msk [vmem:[#allocation5] sm:$0xff] %vm35_vm1, %v34_v4 }
  0x7d   :  { %47 = dma.vmem_to_hbm [thread:$0]  %s43_s18, 128, %s45_s0, [#allocation4]  }
  0x7e   :  { %107 = dma.done.wait [#allocation4], 128  }
  0x7f   :  { %108 = vsyncadd [#allocation4], 4294967168 }
  0x80   :  { %52 = vsyncpa [#allocation3], 1 }
  0x81   :  { %53 = vsyncpa [#allocation4], 1 }

</bundles_post_ra>
